<compile_context>
chip_gen: v5e
topology: v5e:2x2
jax: 0.10.0
libtpu: 0.0.40
codegen_flags: <defaults>
</compile_context>

<pallas_src>
import functools

import jax
import jax.numpy as jnp
from jax import lax
from jax.experimental import pallas as pl
from jax.experimental.pallas import tpu as pltpu


def _round_up(x, m):
    return ((x + m - 1) // m) * m


# --------------------------------------------------------------------------
# Kernel 1: thin projection  out = X @ W   (row-tiled, weights VMEM-resident)
# --------------------------------------------------------------------------
def project_kernel(x_ref, w_ref, o_ref):
    o_ref[...] = jnp.dot(
        x_ref[...].astype(jnp.float32),
        w_ref[...].astype(jnp.float32),
        preferred_element_type=jnp.float32,
    ).astype(o_ref.dtype)


def project(x, w, *, tm, out_dtype):
    n, fin = x.shape
    _, fout = w.shape
    return pl.pallas_call(
        project_kernel,
        out_shape=jax.ShapeDtypeStruct((n, fout), out_dtype),
        grid_spec=pltpu.PrefetchScalarGridSpec(
            num_scalar_prefetch=0,
            grid=(n // tm,),
            in_specs=[
                pl.BlockSpec((tm, fin), lambda i: (i, 0)),
                pl.BlockSpec((fin, fout), lambda i: (0, 0)),
            ],
            out_specs=pl.BlockSpec((tm, fout), lambda i: (i, 0)),
        ),
        compiler_params=pltpu.CompilerParams(
            dimension_semantics=("parallel",),
            vmem_limit_bytes=32 << 20,
        ),
        cost_estimate=pl.CostEstimate(
            flops=2 * n * fin * fout,
            transcendentals=0,
            bytes_accessed=n * fin * 4 + fin * fout * 4 + n * fout * 2,
        ),
    )(x, w)


# --------------------------------------------------------------------------
# Kernel 2a: aggregation pass 1  h = relu(A @ XW1 + b1)
#   grid = (rows i [parallel], K k [arbitrary]); f32 accumulator in scratch.
# --------------------------------------------------------------------------
def agg_relu_kernel(a_ref, xw_ref, b_ref, o_ref, acc_ref):
    k = pl.program_id(1)

    @pl.when(k == 0)
    def _():
        acc_ref[...] = jnp.zeros_like(acc_ref)

    acc_ref[...] += jnp.dot(
        a_ref[...], xw_ref[...], preferred_element_type=jnp.float32
    )

    @pl.when(k == pl.num_programs(1) - 1)
    def _():
        h = acc_ref[...] + b_ref[...]
        o_ref[...] = jnp.maximum(h, 0.0).astype(o_ref.dtype)


# --------------------------------------------------------------------------
# Kernel 2b: aggregation pass 2  out = log_softmax(A @ hW2 + b2) over real
#   class columns only (padded lanes masked, then zeroed in the output).
# --------------------------------------------------------------------------
def agg_logsoftmax_kernel(num_classes, a_ref, hw_ref, b_ref, o_ref, acc_ref):
    k = pl.program_id(1)

    @pl.when(k == 0)
    def _():
        acc_ref[...] = jnp.zeros_like(acc_ref)

    acc_ref[...] += jnp.dot(
        a_ref[...], hw_ref[...], preferred_element_type=jnp.float32
    )

    @pl.when(k == pl.num_programs(1) - 1)
    def _():
        z = acc_ref[...] + b_ref[...]                      # (tm, Cp) f32
        col = lax.broadcasted_iota(jnp.int32, z.shape, 1)
        valid = col < num_classes
        neg_inf = jnp.float32(-jnp.inf)
        zm = jnp.where(valid, z, neg_inf)
        m = jnp.max(zm, axis=1, keepdims=True)
        s = zm - m
        ssum = jnp.sum(jnp.where(valid, jnp.exp(s), 0.0), axis=1, keepdims=True)
        lse = jnp.log(ssum)
        o_ref[...] = jnp.where(valid, s - lse, 0.0)


def aggregate(a, feat, bias, kernel_fn, *, tm, tk, fout, out_dtype,
              transcendentals=0):
    n = a.shape[0]
    return pl.pallas_call(
        kernel_fn,
        out_shape=jax.ShapeDtypeStruct((n, fout), out_dtype),
        grid_spec=pltpu.PrefetchScalarGridSpec(
            num_scalar_prefetch=0,
            grid=(n // tm, n // tk),
            in_specs=[
                pl.BlockSpec((tm, tk), lambda i, k: (i, k)),    # A tile (bf16)
                pl.BlockSpec((tk, fout), lambda i, k: (k, 0)),  # features
                pl.BlockSpec((1, fout), lambda i, k: (0, 0)),   # bias (resident)
            ],
            out_specs=pl.BlockSpec((tm, fout), lambda i, k: (i, 0)),
            scratch_shapes=[pltpu.VMEM((tm, fout), jnp.float32)],
        ),
        compiler_params=pltpu.CompilerParams(
            dimension_semantics=("parallel", "arbitrary"),
            vmem_limit_bytes=32 << 20,
        ),
        cost_estimate=pl.CostEstimate(
            flops=2 * n * n * fout,
            transcendentals=transcendentals,
            bytes_accessed=n * n * 2 + n * fout * 2 + n * fout * 4,
        ),
    )(a, feat, bias)


# --------------------------------------------------------------------------
# Graph preprocessing (plain JAX glue)
# --------------------------------------------------------------------------
def build_normalized_adjacency(edge_index, num_nodes):
    """Dense A_hat = D^{-1/2} (A + I) D^{-1/2} (PyG gcn_norm, self loops).

    edge_index: (2, E) int array (row0 = src, row1 = dst); messages flow
    src -> dst, duplicate edges accumulate (matches PyG's scatter-add).
    """
    a = jnp.zeros((num_nodes, num_nodes), dtype=jnp.float32)
    if edge_index.shape[1] > 0:
        src = edge_index[0]
        dst = edge_index[1]
        a = a.at[dst, src].add(1.0)
    a = a + jnp.eye(num_nodes, dtype=jnp.float32)
    deg = jnp.sum(a, axis=1)
    dinv = jnp.where(deg > 0, 1.0 / jnp.sqrt(deg), 0.0)
    return dinv[:, None] * a * dinv[None, :]


# --------------------------------------------------------------------------
# Full GCN forward
# --------------------------------------------------------------------------
def gcn_forward(x, edge_index, params):
    n, fin = x.shape
    hidden = params["w1"].shape[1]
    num_classes = params["w2"].shape[1]

    # Padded sizes: nodes -> multiple of 128; hidden / classes -> 128 lanes.
    np_ = max(128, _round_up(n, 128))
    tm = 128
    tk = 512 if np_ % 512 == 0 else (256 if np_ % 256 == 0 else 128)
    hp = _round_up(max(hidden, 128), 128)
    cp = _round_up(max(num_classes, 128), 128)

    # Dense normalized adjacency, bf16 (dominant HBM operand), zero-padded.
    a_hat = build_normalized_adjacency(edge_index, n)
    a_pad = jnp.zeros((np_, np_), jnp.float32).at[:n, :n].set(a_hat)
    a_pad = a_pad.astype(jnp.bfloat16)

    x_pad = jnp.zeros((np_, fin), jnp.float32).at[:n, :].set(
        x.astype(jnp.float32))

    w1 = jnp.zeros((fin, hp), jnp.float32).at[:, :hidden].set(params["w1"])
    b1 = jnp.zeros((1, hp), jnp.float32).at[:, :hidden].set(
        params["b1"].reshape(1, -1))
    w2 = jnp.zeros((hp, cp), jnp.float32).at[:hidden, :num_classes].set(
        params["w2"])
    b2 = jnp.zeros((1, cp), jnp.float32).at[:, :num_classes].set(
        params["b2"].reshape(1, -1))

    # ---- layer 1: h = relu(A @ (X @ W1) + b1) ----
    xw1 = project(x_pad, w1, tm=tm, out_dtype=jnp.bfloat16)          # (Np, Hp)
    h = aggregate(a_pad, xw1, b1, agg_relu_kernel,
                  tm=tm, tk=tk, fout=hp, out_dtype=jnp.bfloat16)      # (Np, Hp)

    # ---- layer 2: out = log_softmax(A @ (h @ W2) + b2) ----
    hw2 = project(h, w2, tm=tm, out_dtype=jnp.bfloat16)               # (Np, Cp)
    kern2 = functools.partial(agg_logsoftmax_kernel, num_classes)
    out = aggregate(a_pad, hw2, b2, kern2,
                    tm=tm, tk=tk, fout=cp, out_dtype=jnp.float32,
                    transcendentals=np_ * cp + np_)                   # (Np, Cp)

    return out[:n, :num_classes]


def init_gcn_params(key, num_node_features, num_classes, hidden=16):
    """Deterministic glorot-uniform weights, zero biases (GCNConv default)."""
    k1, k2 = jax.random.split(key)

    def glorot(k, fan_in, fan_out):
        limit = jnp.sqrt(6.0 / (fan_in + fan_out))
        return jax.random.uniform(
            k, (fan_in, fan_out), jnp.float32, minval=-limit, maxval=limit
        )

    return {
        "w1": glorot(k1, num_node_features, hidden),
        "b1": jnp.zeros((1, hidden), jnp.float32),
        "w2": glorot(k2, hidden, num_classes),
        "b2": jnp.zeros((1, num_classes), jnp.float32),
    }


def gcn_reference(x, edge_index, params):
    """Pure-JAX f32 reference for correctness check."""
    a = build_normalized_adjacency(edge_index, x.shape[0])
    h = a @ (x @ params["w1"]) + params["b1"]
    h = jnp.maximum(h, 0.0)
    z = a @ (h @ params["w2"]) + params["b2"]
    return jax.nn.log_softmax(z, axis=1)


if __name__ == "__main__":
    key = jax.random.PRNGKey(0)
    kx, kp = jax.random.split(key)

    num_nodes = 8
    num_node_features = 4
    num_classes = 3

    x = jax.random.normal(kx, (num_nodes, num_node_features), jnp.float32)
    # Small deterministic edge list; module's global `edges` is empty but the
    # forward signature takes edge_index, so we exercise a real one.
    edge_index = jnp.array(
        [[0, 1, 2, 3, 4, 5, 6, 7],
         [1, 0, 3, 2, 5, 4, 7, 6]],
        dtype=jnp.int32,
    )

    params = init_gcn_params(kp, num_node_features, num_classes)

    out = gcn_forward(x, edge_index, params)
    out = jax.block_until_ready(out)

    assert out.shape == (num_nodes, num_classes)
    # rows of log_softmax should exp-sum to 1 (softmax done in f32 in-kernel)
    assert jnp.allclose(jnp.sum(jnp.exp(out), axis=1), 1.0, atol=1e-4)
    # match the f32 reference within bf16 tolerance
    ref = gcn_reference(x, edge_index, params)
    assert jnp.allclose(out, ref, atol=1e-1), float(jnp.max(jnp.abs(out - ref)))

    print("KERNEL_OK")
</pallas_src>

<mosaic_0001>
module attributes {stable_mosaic.version = 11 : i64} {
  func.func @project_kernel(%arg0: i32, %arg1: memref<128x4xf32, #tpu.memory_space<vmem>>, %arg2: memref<4x128xf32, #tpu.memory_space<vmem>>, %arg3: memref<128x128xbf16, #tpu.memory_space<vmem>>) attributes {dimension_semantics = [#tpu.dimension_semantics<parallel>], iteration_bounds = array<i64: 1>, scalar_prefetch = 0 : i64, scratch_operands = 0 : i64, tpu.core_type = #tpu.core_type<tc>, window_params = [{transform_indices = @transform_0, window_bounds = array<i64: 128, 4>}, {pipeline_mode = #tpu.pipeline_mode<synchronous>, transform_indices = @transform_1, window_bounds = array<i64: 4, 128>}, {transform_indices = @transform_2, window_bounds = array<i64: 128, 128>}]} {
    %c0 = arith.constant 0 : index
    %c0_0 = arith.constant 0 : index
    %0 = vector.load %arg1[%c0, %c0_0] : memref<128x4xf32, #tpu.memory_space<vmem>>, vector<128x4xf32>
    %c0_1 = arith.constant 0 : index
    %c0_2 = arith.constant 0 : index
    %1 = vector.load %arg2[%c0_1, %c0_2] : memref<4x128xf32, #tpu.memory_space<vmem>>, vector<4x128xf32>
    %cst = arith.constant dense<0.000000e+00> : vector<128x128xf32>
    %2 = tpu.matmul %0, %1, %cst {dimension_numbers = #tpu.dot_dimension_numbers<[1], [0], [0], [1], [0, 0, 1, 1], [], []>} : vector<128x4xf32>, vector<4x128xf32>, vector<128x128xf32> -> vector<128x128xf32>
    %3 = arith.truncf %2 : vector<128x128xf32> to vector<128x128xbf16>
    %c0_3 = arith.constant 0 : index
    %c0_4 = arith.constant 0 : index
    %4 = vector.load %arg3[%c0_3, %c0_4] : memref<128x128xbf16, #tpu.memory_space<vmem>>, vector<128x128xbf16>
    tpu.vector_store %arg3[%c0_3, %c0_4], %3 {strides = array<i32>} : memref<128x128xbf16, #tpu.memory_space<vmem>>, vector<128x128xbf16>,
    return
  }
  func.func @transform_0(%arg0: i32) -> (i32, i32) {
    %c0_i32 = arith.constant 0 : i32
    %c0_i32_0 = arith.constant 0 : i32
    return %arg0, %c0_i32 : i32, i32
  }
  func.func @transform_1(%arg0: i32) -> (i32, i32) {
    %c0_i32 = arith.constant 0 : i32
    %c0_i32_0 = arith.constant 0 : i32
    %c0_i32_1 = arith.constant 0 : i32
    return %c0_i32, %c0_i32_0 : i32, i32
  }
  func.func @transform_2(%arg0: i32) -> (i32, i32) {
    %c0_i32 = arith.constant 0 : i32
    %c0_i32_0 = arith.constant 0 : i32
    return %arg0, %c0_i32 : i32, i32
  }
}

</mosaic_0001>

<bundles_post_ra>
// kernel: tpu_custom_call.1
= control target key start
LH: loop header
LB: loop body
LE: loop exit
PB: predicated region body
PF: predicated region fallthrough
CT: control target
= control target key end

     0   :  { %vm78_vm0 = vcmask 1043456   ;;  %vm29_vm1 = vcmask 31744   ;;  %s381_s0 = inlined_call_operand.vmem [shape: f32[128,4], index: 0, kind: input, shape index: {}]   ;;  %s382_s1 = inlined_call_operand.vmem [shape: f32[4,128], index: 1, kind: input, shape index: {}]   ;;  %s383_s2 = inlined_call_operand.hbm [shape: bf16[128,128], index: 2, kind: output, shape index: {}]  }
   0x1   :  { %v28_v0 = vld [vmem:[%s382_s1] sm:$0xf] }
   0x2   :  { %v12_v1 = vld [vmem:[%s381_s0] sm:$0xff]  ;;  %197 = vmatpush.msk.msra.mxu0 %vm78_vm0, %v28_v0  ;;  %261 = vmatpush.msk.msra.mxu1 %vm78_vm0, %v28_v0 }
   0x3   :  { %v16_v2 = vld [vmem:[%s381_s0 + $0x20] sm:$0xff]  ;;  %262 = vmatpush.msk.msra.mxu2 %vm78_vm0, %v28_v0  ;;  %263 = vmatpush.msk.msra.mxu3 %vm78_vm0, %v28_v0 }
   0x4   :  { %v20_v3 = vld [vmem:[%s381_s0 + $0x40] sm:$0xff]  ;;  %198 = vmatmul.msk.f32.vlgmr.msra.gmra.mxu0 %vm29_vm1, %v12_v1  ;;  %202 = vmatmul.msk.f32.vlgmr.msra.gmra.mxu1 %vm29_vm1, %v16_v2 }
   0x5   :  { %v24_v4 = vld [vmem:[%s381_s0 + $0x60] sm:$0xff]  ;;  %206 = vmatmul.msk.f32.vlgmr.msra.gmra.mxu2 %vm29_vm1, %v20_v3 }
   0x6   :  { %210 = vmatmul.msk.f32.vlgmr.msra.gmra.mxu3 %vm29_vm1, %v24_v4 }
   0x7   :  { %7 = vsyncpa [#allocation3], 0  ;;  %v13_v5 = vld [vmem:[%s381_s0 + $0x8] sm:$0xff]  ;;  %v14_v9 = vld [vmem:[%s381_s0 + $0x10] sm:$0xff]  ;;  %s185_s17 = sshll.u32 %s383_s2, 4  ;;  %s294_s18 = smov 64   ;;  %s186_s17 = int_to_ptr.hbm [resolvable:$true] %s185_s17 }
   0x8   :  { %v17_v6 = vld [vmem:[%s381_s0 + $0x28] sm:$0xff]  ;;  %v18_v10 = vld [vmem:[%s381_s0 + $0x30] sm:$0xff]  ;;  %v15_v13 = vld [vmem:[%s381_s0 + $0x18] sm:$0xff]  ;;  %s295_s1 = smov 4  }
   0x9   :  { %v21_v7 = vld [vmem:[%s381_s0 + $0x48] sm:$0xff]  ;;  %v22_v11 = vld [vmem:[%s381_s0 + $0x50] sm:$0xff]  ;;  %v19_v14 = vld [vmem:[%s381_s0 + $0x38] sm:$0xff] }
   0xa   :  { %v25_v8 = vld [vmem:[%s381_s0 + $0x68] sm:$0xff]  ;;  %v26_v12 = vld [vmem:[%s381_s0 + $0x70] sm:$0xff]  ;;  %v23_v15 = vld [vmem:[%s381_s0 + $0x58] sm:$0xff] }
   0xb   :  { %v27_v16 = vld [vmem:[%s381_s0 + $0x78] sm:$0xff]  ;;  %s293_s0 = smov [#allocation2]  }
   0xc   :  { %199 = vmatmul.msk.f32.gmra.mxu0 %vm29_vm1, %v13_v5  ;;  %203 = vmatmul.msk.f32.gmra.mxu1 %vm29_vm1, %v17_v6  ;;  %s183_s14 = sshll.u32 %s293_s0, 4  ;;  %s184_s14 = int_to_ptr.vmem [resolvable:$true] %s183_s14 }
   0xd   :  { %207 = vmatmul.msk.f32.gmra.mxu2 %vm29_vm1, %v21_v7 }
   0xe   :  { %211 = vmatmul.msk.f32.gmra.mxu3 %vm29_vm1, %v25_v8 }
  0x14   :  { %200 = vmatmul.msk.f32.gmra.mxu0 %vm29_vm1, %v14_v9  ;;  %204 = vmatmul.msk.f32.gmra.mxu1 %vm29_vm1, %v18_v10 }
  0x15   :  { %208 = vmatmul.msk.f32.gmra.mxu2 %vm29_vm1, %v22_v11 }
  0x16   :  { %212 = vmatmul.msk.f32.gmra.mxu3 %vm29_vm1, %v26_v12 }
  0x1c   :  { %201 = vmatmul.msk.f32.gmra.mxu0 %vm29_vm1, %v15_v13  ;;  %205 = vmatmul.msk.f32.gmra.mxu1 %vm29_vm1, %v19_v14 }
  0x1d   :  { %209 = vmatmul.msk.f32.gmra.mxu2 %vm29_vm1, %v23_v15 }
  0x1e   :  { %213 = vmatmul.msk.f32.gmra.mxu3 %vm29_vm1, %v27_v16 }
  0x81   :  { %v99_v17 = vpop.f32.mrf.mxu0  ;;  %v111_v18 = vpop.f32.mrf.mxu1 }
  0x88   :  { %v123_v19 = vpop.f32.mrf.mxu2 }
  0x89   :  { %v135_v20 = vpop.f32.mrf.mxu3  ;;  %v102_v21 = vpop.f32.mrf.mxu0 }
  0x8a   :  { %v114_v22 = vpop.f32.mrf.mxu1  ;;  %v217_v23 = vpack.c.bf16 %v102_v21, %v99_v17 }
  0x8b   :  { %v227_v24 = vpack.c.bf16 %v114_v22, %v111_v18 }
  0x8c   :  { %218 = vst [vmem:[#allocation2] sm:$0xff] %v217_v23  }
  0x8d   :  { %255 = vst [vmem:[#allocation2 + $0x10] sm:$0xff] %v227_v24  }
  0x90   :  { %v126_v25 = vpop.f32.mrf.mxu2 }
  0x91   :  { %v138_v26 = vpop.f32.mrf.mxu3  ;;  %v237_v27 = vpack.c.bf16 %v126_v25, %v123_v19  ;;  %v105_v29 = vpop.f32.mrf.mxu0 }
  0x92   :  { %v247_v28 = vpack.c.bf16 %v138_v26, %v135_v20  ;;  %v117_v30 = vpop.f32.mrf.mxu1 }
  0x93   :  { %257 = vst [vmem:[#allocation2 + $0x20] sm:$0xff] %v237_v27  }
  0x94   :  { %259 = vst [vmem:[#allocation2 + $0x30] sm:$0xff] %v247_v28  }
  0x98   :  { %v129_v31 = vpop.f32.mrf.mxu2 }
  0x99   :  { %v141_v32 = vpop.f32.mrf.mxu3  ;;  %v108_v33 = vpop.f32.mrf.mxu0 }
  0x9a   :  { %v120_v34 = vpop.f32.mrf.mxu1  ;;  %v222_v35 = vpack.c.bf16 %v108_v33, %v105_v29 }
  0x9b   :  { %v232_v36 = vpack.c.bf16 %v120_v34, %v117_v30 }
  0x9c   :  { %254 = vst [vmem:[#allocation2 + $0x8] sm:$0xff] %v222_v35  }
  0x9d   :  { %256 = vst [vmem:[#allocation2 + $0x18] sm:$0xff] %v232_v36  }
  0xa0   :  { %v132_v37 = vpop.f32.mrf.mxu2 }
  0xa1   :  { %v144_v38 = vpop.f32.mrf.mxu3  ;;  %v242_v39 = vpack.c.bf16 %v132_v37, %v129_v31 }
  0xa2   :  { %v252_v40 = vpack.c.bf16 %v144_v38, %v141_v32 }
  0xa3   :  { %258 = vst [vmem:[#allocation2 + $0x28] sm:$0xff] %v242_v39  }
  0xa4   :  { %260 = vst [vmem:[#allocation2 + $0x38] sm:$0xff] %v252_v40  }
  0xa5   :  { %191 = dma.vmem_to_hbm [thread:$0]  %s184_s14, 1024, %s186_s17, [#allocation3], %s294_s18, %s294_s18, %s295_s1  }
  0xa6   :  { %291 = dma.done.wait [#allocation3], 1024  }
  0xa7   :  { %292 = vsyncadd [#allocation3], 4294966272 }
  0xa8   :  { %196 = vsyncpa [#allocation3], 1 }

</bundles_post_ra>
